<compile_context>
chip_gen: v7x
topology: tpu7x:2x2x1
jax: 0.10.0
libtpu: 0.0.40
codegen_flags: <defaults>
</compile_context>

<pallas_src>
import jax
import jax.numpy as jnp
from jax.experimental import pallas as pl
from jax.experimental.pallas import tpu as pltpu


def regnet_kernel(xt_ref, w1t_ref, b1_ref, w2_ref, b2_ref, o_ref):
    # fc1 on the MXU, batch along lanes: (Hp, D) @ (D, TB) -> (Hp, TB), f32 acc.
    h = jnp.dot(w1t_ref[...], xt_ref[...], preferred_element_type=jnp.float32)
    h = jnp.maximum(h + b1_ref[...], 0.0)                     # bias + ReLU on the VPU
    # fc2 (output width 1): VPU multiply + sublane reduction instead of an N=1 matmul.
    out = jnp.sum(h * w2_ref[...], axis=0, keepdims=True) + b2_ref[0]   # (1, TB)
    o_ref[...] = out.astype(o_ref.dtype)                      # lane-dense (1, TB) store


def regnet_forward(x, w1, b1, w2, b2, *, block_b=1024, input_dtype=None):
    """x: (B, D); w1: (D, H); b1: (H,); w2: (H, 1); b2: (1,) -> (B, 1).

    Weights use (in_features, out_features) layout (transposed vs. PyTorch).
    Pass input_dtype=jnp.bfloat16 to run fc1 with bf16 inputs / f32 accumulation
    (recommended on v6e / v7x to halve HBM traffic on x).
    """
    assert block_b % 128 == 0
    B, D = x.shape
    H = w1.shape[1]
    Hp = ((H + 127) // 128) * 128                 # pad hidden to full lane width
    tb = min(block_b, ((B + 127) // 128) * 128)   # don't over-pad tiny batches
    Bp = ((B + tb - 1) // tb) * tb
    grid = Bp // tb

    in_dt = x.dtype if input_dtype is None else input_dtype

    # Zero padding is exact through ReLU and the fc2 weighted sum.
    xt = jnp.zeros((D, Bp), in_dt).at[:, :B].set(x.T.astype(in_dt))
    w1t = jnp.zeros((Hp, D), in_dt).at[:H, :].set(w1.T.astype(in_dt))
    b1c = jnp.zeros((Hp, 1), jnp.float32).at[:H, 0].set(b1.astype(jnp.float32))
    w2c = jnp.zeros((Hp, 1), jnp.float32).at[:H, :].set(w2.astype(jnp.float32))
    b2s = b2.reshape(1).astype(jnp.float32)

    out = pl.pallas_call(
        regnet_kernel,
        out_shape=jax.ShapeDtypeStruct((1, Bp), x.dtype),
        grid_spec=pl.GridSpec(
            grid=(grid,),
            in_specs=[
                pl.BlockSpec((D, tb), lambda i: (0, i)),            # x tile (streamed)
                pl.BlockSpec((Hp, D), lambda i: (0, 0)),            # W1^T (VMEM-resident)
                pl.BlockSpec((Hp, 1), lambda i: (0, 0)),            # b1   (VMEM-resident)
                pl.BlockSpec((Hp, 1), lambda i: (0, 0)),            # w2   (VMEM-resident)
                pl.BlockSpec(memory_space=pltpu.MemorySpace.SMEM),  # b2 scalar in SMEM
            ],
            out_specs=pl.BlockSpec((1, tb), lambda i: (0, i)),      # lane-dense output
        ),
        compiler_params=pltpu.CompilerParams(
            dimension_semantics=("parallel",),   # batch tiles independent -> 2 TCs on v7x
            vmem_limit_bytes=32 * 1024 * 1024,   # headroom even on v7x (64 MiB VMEM)
        ),
    )(xt, w1t, b1c, w2c, b2s)

    return out.reshape(Bp)[:B].reshape(B, 1)


def regnet_reference(x, w1, b1, w2, b2):
    h = jnp.maximum(x @ w1 + b1, 0.0)
    return h @ w2 + b2


if __name__ == "__main__":
    # Small shapes consistent with the module: batch=8, input_size=32, hidden=100.
    B, D, H = 8, 32, 100
    key = jax.random.PRNGKey(0)
    kx, kw1, kb1, kw2, kb2 = jax.random.split(key, 5)

    x = jax.random.normal(kx, (B, D), dtype=jnp.float32)
    # Deterministic synthetic parameter init (PyTorch-like uniform scale).
    w1 = jax.random.uniform(kw1, (D, H), jnp.float32, -1.0, 1.0) / jnp.sqrt(D)
    b1 = jax.random.uniform(kb1, (H,), jnp.float32, -1.0, 1.0) / jnp.sqrt(D)
    w2 = jax.random.uniform(kw2, (H, 1), jnp.float32, -1.0, 1.0) / jnp.sqrt(H)
    b2 = jax.random.uniform(kb2, (1,), jnp.float32, -1.0, 1.0) / jnp.sqrt(H)

    out = jax.block_until_ready(jax.jit(regnet_forward)(x, w1, b1, w2, b2))

    ref = regnet_reference(x, w1, b1, w2, b2)
    assert out.shape == (B, 1), out.shape
    assert jnp.allclose(out, ref, atol=1e-5, rtol=1e-5), (out, ref)

    print("KERNEL_OK")
</pallas_src>

<mosaic_0001>
module attributes {stable_mosaic.version = 11 : i64} {
  func.func @regnet_kernel(%arg0: i32, %arg1: memref<32x128xf32, #tpu.memory_space<vmem>>, %arg2: memref<128x32xf32, #tpu.memory_space<vmem>>, %arg3: memref<128x1xf32, #tpu.memory_space<vmem>>, %arg4: memref<128x1xf32, #tpu.memory_space<vmem>>, %arg5: memref<1xf32, #tpu.memory_space<smem>>, %arg6: memref<1x128xf32, #tpu.memory_space<vmem>>) attributes {dimension_semantics = [#tpu.dimension_semantics<parallel>], iteration_bounds = array<i64: 1>, scalar_prefetch = 0 : i64, scratch_operands = 0 : i64, tpu.core_type = #tpu.core_type<tc>, window_params = [{transform_indices = @transform_0, window_bounds = array<i64: 32, 128>}, {pipeline_mode = #tpu.pipeline_mode<synchronous>, transform_indices = @transform_1, window_bounds = array<i64: 128, 32>}, {pipeline_mode = #tpu.pipeline_mode<synchronous>, transform_indices = @transform_2, window_bounds = array<i64: 128, 1>}, {pipeline_mode = #tpu.pipeline_mode<synchronous>, transform_indices = @transform_3, window_bounds = array<i64: 128, 1>}, {transform_indices = @transform_4, window_bounds = array<i64: 1>}, {transform_indices = @transform_5, window_bounds = array<i64: 1, 128>}]} {
    %c0 = arith.constant 0 : index
    %c0_0 = arith.constant 0 : index
    %0 = vector.load %arg2[%c0, %c0_0] : memref<128x32xf32, #tpu.memory_space<vmem>>, vector<128x32xf32>
    %c0_1 = arith.constant 0 : index
    %c0_2 = arith.constant 0 : index
    %1 = vector.load %arg1[%c0_1, %c0_2] : memref<32x128xf32, #tpu.memory_space<vmem>>, vector<32x128xf32>
    %cst = arith.constant dense<0.000000e+00> : vector<128x128xf32>
    %2 = tpu.matmul %0, %1, %cst {dimension_numbers = #tpu.dot_dimension_numbers<[1], [0], [0], [1], [0, 0, 1, 1], [], []>} : vector<128x32xf32>, vector<32x128xf32>, vector<128x128xf32> -> vector<128x128xf32>
    %c0_3 = arith.constant 0 : index
    %c0_4 = arith.constant 0 : index
    %3 = vector.load %arg3[%c0_3, %c0_4] : memref<128x1xf32, #tpu.memory_space<vmem>>, vector<128x1xf32>
    %4 = vector.broadcast %3 : vector<128x1xf32> to vector<128x128xf32>
    %5 = arith.addf %2, %4 : vector<128x128xf32>
    %cst_5 = arith.constant 0.000000e+00 : f32
    %6 = vector.broadcast %cst_5 : f32 to vector<128x128xf32>
    %7 = arith.maximumf %5, %6 : vector<128x128xf32>
    %c0_6 = arith.constant 0 : index
    %c0_7 = arith.constant 0 : index
    %8 = vector.load %arg4[%c0_6, %c0_7] : memref<128x1xf32, #tpu.memory_space<vmem>>, vector<128x1xf32>
    %9 = vector.broadcast %8 : vector<128x1xf32> to vector<128x128xf32>
    %10 = arith.mulf %7, %9 : vector<128x128xf32>
    %cst_8 = arith.constant dense<0.000000e+00> : vector<128xf32>
    %11 = vector.multi_reduction <add>, %10, %cst_8 [0] : vector<128x128xf32> to vector<128xf32>
    %12 = vector.shape_cast %11 : vector<128xf32> to vector<1x128xf32>
    %c0_9 = arith.constant 0 : index
    %13 = memref.load %arg5[%c0_9] : memref<1xf32, #tpu.memory_space<smem>>
    %14 = vector.broadcast %13 : f32 to vector<1x128xf32>
    %15 = arith.addf %12, %14 : vector<1x128xf32>
    %c0_10 = arith.constant 0 : index
    %c0_11 = arith.constant 0 : index
    %16 = vector.load %arg6[%c0_10, %c0_11] : memref<1x128xf32, #tpu.memory_space<vmem>>, vector<1x128xf32>
    tpu.vector_store %arg6[%c0_10, %c0_11], %15 {strides = array<i32>} : memref<1x128xf32, #tpu.memory_space<vmem>>, vector<1x128xf32>,
    return
  }
  func.func @transform_0(%arg0: i32) -> (i32, i32) {
    %c0_i32 = arith.constant 0 : i32
    %c0_i32_0 = arith.constant 0 : i32
    return %c0_i32, %arg0 : i32, i32
  }
  func.func @transform_1(%arg0: i32) -> (i32, i32) {
    %c0_i32 = arith.constant 0 : i32
    %c0_i32_0 = arith.constant 0 : i32
    %c0_i32_1 = arith.constant 0 : i32
    return %c0_i32, %c0_i32_0 : i32, i32
  }
  func.func @transform_2(%arg0: i32) -> (i32, i32) {
    %c0_i32 = arith.constant 0 : i32
    %c0_i32_0 = arith.constant 0 : i32
    %c0_i32_1 = arith.constant 0 : i32
    return %c0_i32, %c0_i32_0 : i32, i32
  }
  func.func @transform_3(%arg0: i32) -> (i32, i32) {
    %c0_i32 = arith.constant 0 : i32
    %c0_i32_0 = arith.constant 0 : i32
    %c0_i32_1 = arith.constant 0 : i32
    return %c0_i32, %c0_i32_0 : i32, i32
  }
  func.func @transform_4(%arg0: i32) -> i32 {
    %c0_i32 = arith.constant 0 : i32
    %c0_i32_0 = arith.constant 0 : i32
    return %c0_i32 : i32
  }
  func.func @transform_5(%arg0: i32) -> (i32, i32) {
    %c0_i32 = arith.constant 0 : i32
    %c0_i32_0 = arith.constant 0 : i32
    return %c0_i32, %arg0 : i32, i32
  }
}

</mosaic_0001>

<bundles_post_ra>
// kernel: regnet_forward.1
= control target key start
LH: loop header
LB: loop body
LE: loop exit
PB: predicated region body
PF: predicated region fallthrough
CT: control target
= control target key end

     0   :  { %v571_v2 = vmov 0   ;;  %vm137_vm0 = vcmask 261120   ;;  %s780_s0 = inlined_call_operand.vmem [shape: f32[32,128], index: 0, kind: input, shape index: {}]   ;;  %s781_s2 = inlined_call_operand.vmem [shape: f32[128,1], index: 2, kind: input, shape index: {}]   ;;  %s782_s1 = inlined_call_operand.vmem [shape: f32[128,32], index: 1, kind: input, shape index: {}]   ;;  %s783_s3 = inlined_call_operand.vmem [shape: f32[128,1], index: 3, kind: input, shape index: {}]   ;;  %s784_s4 = inlined_call_operand.<no memory space> [shape: f32[1], index: 4, kind: input, shape index: {}]   ;;  %s785_s5 = inlined_call_operand.vmem [shape: f32[1,128], index: 5, kind: output, shape index: {}]  }
   0x1   :  { %v37_v0 = vld [vmem:[%s780_s0] sm:$0xff]  ;;  %v38_v1 = vld [vmem:[%s780_s0 + $0x8] sm:$0xff]  ;;  %569 = vset.pattern.permute.xlu0 %v571_v2  ;;  %v39_v3 = vld [vmem:[%s780_s0 + $0x10] sm:$0xff]  ;;  %570 = vset.pattern.permute.xlu1 %v571_v2 }
   0x2   :  { %v556_v4 = vpack.c.bf16 %v38_v1, %v37_v0  ;;  %v40_v5 = vld [vmem:[%s780_s0 + $0x18] sm:$0xff]  ;;  %v41_v6 = vld [vmem:[%s781_s2] sm:$0xff]  ;;  %v43_v7 = vld [vmem:[%s781_s2 + $0x10] sm:$0xff] }
   0x3   :  { %v560_v8 = vpack.c.bf16 %v40_v5, %v39_v3  ;;  %59 = vperm.xlu0 %569, %v41_v6   ;;  %69 = vperm.xlu1 %570, %v43_v7   ;;  %v21_v9 = vld [vmem:[%s782_s1] sm:$0xff]  ;;  %v42_v11 = vld [vmem:[%s781_s2 + $0x8] sm:$0xff]  ;;  %v44_v12 = vld [vmem:[%s781_s2 + $0x18] sm:$0xff] }
   0x4   :  { %557 = vmatprep.subr.bf16.mxu0 %v556_v4  ;;  %564 = vmatprep.subr.bf16.mxu1 %v556_v4  ;;  %v29_v10 = vld [vmem:[%s782_s1 + $0x40] sm:$0xff]  ;;  %v22_v13 = vld [vmem:[%s782_s1 + $0x8] sm:$0xff]  ;;  %v23_v15 = vld [vmem:[%s782_s1 + $0x10] sm:$0xff] }
   0x5   :  { %559 = vmatpush3.bf16.msra.mxu0 %v556_v4  ;;  %566 = vmatpush3.bf16.msra.mxu1 %v556_v4  ;;  %v30_v14 = vld [vmem:[%s782_s1 + $0x48] sm:$0xff]  ;;  %v31_v16 = vld [vmem:[%s782_s1 + $0x50] sm:$0xff]  ;;  %v45_v17 = vld [vmem:[%s781_s2 + $0x20] sm:$0xff] }
   0x6   :  { %561 = vmatprep.subr.bf16.mxu0 %v560_v8  ;;  %565 = vmatprep.subr.bf16.mxu1 %v560_v8  ;;  %v347_v18 = vld [vmem:[%s783_s3] sm:$0xff]  ;;  %v24_v19 = vld [vmem:[%s782_s1 + $0x18] sm:$0xff]  ;;  %v348_v23 = vld [vmem:[%s783_s3 + $0x8] sm:$0xff] }
   0x7   :  { %532 = vmatprep.mubr.msk.f32.mxu0 %vm137_vm0, %v21_v9  ;;  %544 = vmatprep.mubr.msk.f32.mxu1 %vm137_vm0, %v29_v10  ;;  %v32_v20 = vld [vmem:[%s782_s1 + $0x58] sm:$0xff]  ;;  %v25_v21 = vld [vmem:[%s782_s1 + $0x20] sm:$0xff]  ;;  %v349_v24 = vld [vmem:[%s783_s3 + $0x10] sm:$0xff] }
   0x8   :  { %64 = vperm.xlu0 %569, %v42_v11   ;;  %74 = vperm.xlu1 %570, %v44_v12   ;;  %v33_v22 = vld [vmem:[%s782_s1 + $0x60] sm:$0xff]  ;;  %v26_v25 = vld [vmem:[%s782_s1 + $0x28] sm:$0xff]  ;;  %v27_v27 = vld [vmem:[%s782_s1 + $0x30] sm:$0xff] }
   0x9   :  { %563 = vmatpush3.bf16.msra.mxu0 %v560_v8  ;;  %567 = vmatpush3.bf16.msra.mxu1 %v560_v8  ;;  %v34_v26 = vld [vmem:[%s782_s1 + $0x68] sm:$0xff]  ;;  %v35_v28 = vld [vmem:[%s782_s1 + $0x70] sm:$0xff]  ;;  %v350_v30 = vld [vmem:[%s783_s3 + $0x18] sm:$0xff] }
   0xa   :  { %v46_v29 = vld [vmem:[%s781_s2 + $0x28] sm:$0xff]  ;;  %v28_v31 = vld [vmem:[%s782_s1 + $0x38] sm:$0xff]  ;;  %v47_v33 = vld [vmem:[%s781_s2 + $0x30] sm:$0xff] }
   0xb   :  { %v36_v32 = vld [vmem:[%s782_s1 + $0x78] sm:$0xff]  ;;  %v351_v34 = vld [vmem:[%s783_s3 + $0x20] sm:$0xff]  ;;  %v352_v36 = vld [vmem:[%s783_s3 + $0x28] sm:$0xff] }
   0xc   :  { %533 = vmatmul.mubr.msk.f32.vlgmr.msra.gmra.mrb[0].mxu0 %vm137_vm0, %v22_v13  ;;  %545 = vmatmul.mubr.msk.f32.vlgmr.msra.gmra.mrb[0].mxu1 %vm137_vm0, %v30_v14  ;;  %v48_v35 = vld [vmem:[%s781_s2 + $0x38] sm:$0xff]  ;;  %v49_v37 = vld [vmem:[%s781_s2 + $0x40] sm:$0xff]  ;;  %v353_v38 = vld [vmem:[%s783_s3 + $0x30] sm:$0xff] }
   0xd   :  { %535 = vmatprep.mubr.msk.f32.mxu0 %vm137_vm0, %v23_v15  ;;  %547 = vmatprep.mubr.msk.f32.mxu1 %vm137_vm0, %v31_v16  ;;  %v50_v39 = vld [vmem:[%s781_s2 + $0x48] sm:$0xff]  ;;  %v354_v40 = vld [vmem:[%s783_s3 + $0x38] sm:$0xff]  ;;  %v51_v41 = vld [vmem:[%s781_s2 + $0x50] sm:$0xff] }
   0xe   :  { %79 = vperm.xlu0 %569, %v45_v17   ;;  %365 = vperm.xlu1 %570, %v347_v18   ;;  %v355_v42 = vld [vmem:[%s783_s3 + $0x40] sm:$0xff]  ;;  %v52_v43 = vld [vmem:[%s781_s2 + $0x58] sm:$0xff]  ;;  %v356_v44 = vld [vmem:[%s783_s3 + $0x48] sm:$0xff] }
   0xf   :  { %v53_v45 = vld [vmem:[%s781_s2 + $0x60] sm:$0xff]  ;;  %v357_v46 = vld [vmem:[%s783_s3 + $0x50] sm:$0xff]  ;;  %v54_v47 = vld [vmem:[%s781_s2 + $0x68] sm:$0xff] }
  0x10   :  { %536 = vmatmul.mubr.msk.f32.gmra.mrb[2].mxu0 %vm137_vm0, %v24_v19  ;;  %548 = vmatmul.mubr.msk.f32.gmra.mrb[2].mxu1 %vm137_vm0, %v32_v20  ;;  %v358_v48 = vld [vmem:[%s783_s3 + $0x58] sm:$0xff]  ;;  %v55_v49 = vld [vmem:[%s781_s2 + $0x70] sm:$0xff]  ;;  %v359_v50 = vld [vmem:[%s783_s3 + $0x60] sm:$0xff] }
  0x11   :  { %538 = vmatprep.mubr.msk.f32.mxu0 %vm137_vm0, %v25_v21  ;;  %550 = vmatprep.mubr.msk.f32.mxu1 %vm137_vm0, %v33_v22  ;;  %v56_v51 = vld [vmem:[%s781_s2 + $0x78] sm:$0xff]  ;;  %v360_v52 = vld [vmem:[%s783_s3 + $0x68] sm:$0xff]  ;;  %v361_v53 = vld [vmem:[%s783_s3 + $0x70] sm:$0xff] }
  0x12   :  { %370 = vperm.xlu0 %569, %v348_v23   ;;  %375 = vperm.xlu1 %570, %v349_v24   ;;  %v362_v54 = vld [vmem:[%s783_s3 + $0x78] sm:$0xff] }
  0x14   :  { %539 = vmatmul.mubr.msk.f32.gmra.mrb[4].mxu0 %vm137_vm0, %v26_v25  ;;  %551 = vmatmul.mubr.msk.f32.gmra.mrb[4].mxu1 %vm137_vm0, %v34_v26 }
  0x15   :  { %541 = vmatprep.mubr.msk.f32.mxu0 %vm137_vm0, %v27_v27  ;;  %553 = vmatprep.mubr.msk.f32.mxu1 %vm137_vm0, %v35_v28 }
  0x16   :  { %84 = vperm.xlu0 %569, %v46_v29   ;;  %380 = vperm.xlu1 %570, %v350_v30  }
  0x18   :  { %542 = vmatmul.mubr.msk.f32.gmra.mrb[6].mxu0 %vm137_vm0, %v28_v31  ;;  %554 = vmatmul.mubr.msk.f32.gmra.mrb[6].mxu1 %vm137_vm0, %v36_v32 }
  0x1a   :  { %89 = vperm.xlu0 %569, %v47_v33   ;;  %385 = vperm.xlu1 %570, %v351_v34  }
  0x1e   :  { %94 = vperm.xlu0 %569, %v48_v35   ;;  %390 = vperm.xlu1 %570, %v352_v36  }
  0x22   :  { %99 = vperm.xlu0 %569, %v49_v37   ;;  %395 = vperm.xlu1 %570, %v353_v38  }
  0x26   :  { %104 = vperm.xlu0 %569, %v50_v39   ;;  %400 = vperm.xlu1 %570, %v354_v40  }
  0x2a   :  { %109 = vperm.xlu0 %569, %v51_v41   ;;  %405 = vperm.xlu1 %570, %v355_v42  }
  0x2e   :  { %114 = vperm.xlu0 %569, %v52_v43   ;;  %410 = vperm.xlu1 %570, %v356_v44  }
  0x32   :  { %119 = vperm.xlu0 %569, %v53_v45   ;;  %415 = vperm.xlu1 %570, %v357_v46  }
  0x36   :  { %124 = vperm.xlu0 %569, %v54_v47   ;;  %420 = vperm.xlu1 %570, %v358_v48  }
  0x3a   :  { %129 = vperm.xlu0 %569, %v55_v49   ;;  %425 = vperm.xlu1 %570, %v359_v50  }
  0x3e   :  { %134 = vperm.xlu0 %569, %v56_v51   ;;  %430 = vperm.xlu1 %570, %v360_v52  }
  0x42   :  { %435 = vperm.xlu0 %569, %v361_v53   ;;  %440 = vperm.xlu1 %570, %v362_v54  }
  0x82   :  { %v60_v55 = vpop.permute.xlu0 %59  ;;  %v70_v56 = vpop.permute.xlu1 %69 }
  0x87   :  { %v65_v57 = vpop.permute.xlu0 %64  ;;  %v75_v58 = vpop.permute.xlu1 %74 }
  0x8d   :  { %v80_v59 = vpop.permute.xlu0 %79  ;;  %v366_v60 = vpop.permute.xlu1 %365 }
  0x91   :  { %v371_v61 = vpop.permute.xlu0 %370  ;;  %v376_v62 = vpop.permute.xlu1 %375 }
  0x95   :  { %v85_v63 = vpop.permute.xlu0 %84  ;;  %v381_v0 = vpop.permute.xlu1 %380 }
  0x99   :  { %v90_v1 = vpop.permute.xlu0 %89  ;;  %v386_v2 = vpop.permute.xlu1 %385 }
  0x9d   :  { %v95_v3 = vpop.permute.xlu0 %94  ;;  %v391_v4 = vpop.permute.xlu1 %390 }
  0xa1   :  { %v100_v5 = vpop.permute.xlu0 %99  ;;  %v396_v6 = vpop.permute.xlu1 %395 }
  0xa5   :  { %v105_v7 = vpop.permute.xlu0 %104  ;;  %v401_v8 = vpop.permute.xlu1 %400 }
  0xa9   :  { %v110_v9 = vpop.permute.xlu0 %109  ;;  %v406_v10 = vpop.permute.xlu1 %405 }
  0xad   :  { %v115_v11 = vpop.permute.xlu0 %114  ;;  %v411_v18 = vpop.permute.xlu1 %410 }
  0xb1   :  { %v120_v29 = vpop.permute.xlu0 %119  ;;  %v416_v40 = vpop.permute.xlu1 %415 }
  0xb5   :  { %v125_v54 = vpop.permute.xlu0 %124 }
  0xdf   :  { %v534_v12 = vpop.f32.mrb[0].mxu0  ;;  %v546_v13 = vpop.f32.mrb[0].mxu1 }
  0xe0   :  { %v258_v14 = vadd.f32 %v534_v12, %v65_v57  ;;  %v252_v15 = vpop.f32.mrb[1].mxu0  ;;  %v292_v16 = vpop.f32.mrb[1].mxu1 }
  0xe1   :  { %v253_v17 = vadd.f32 %v252_v15, %v60_v55  ;;  %v293_v50 = vadd.f32 %v292_v16, %v100_v5  ;;  %v298_v55 = vadd.f32 %v546_v13, %v105_v7 }
  0xe2   :  { %v332_v19 = vmax.f32 %v258_v14, 0.0 }
  0xe3   :  { %v331_v20 = vmax.f32 %v253_v17, 0.0  ;;  %v537_v21 = vpop.f32.mrb[2].mxu0  ;;  %v549_v22 = vpop.f32.mrb[2].mxu1  ;;  %v340_v12 = vmax.f32 %v298_v55, 0.0 }
  0xe4   :  { %v444_v23 = vmul.f32 %v371_v61, %v332_v19  ;;  %v268_v24 = vadd.f32 %v537_v21, %v75_v58  ;;  %v262_v25 = vpop.f32.mrb[3].mxu0  ;;  %v302_v26 = vpop.f32.mrb[3].mxu1  ;;  %v339_v61 = vmax.f32 %v293_v50, 0.0  ;;  %v308_v14 = vadd.f32 %v549_v22, %v115_v11 }
  0xe5   :  { %v443_v27 = vmul.f32 %v366_v60, %v331_v20  ;;  %v263_v28 = vadd.f32 %v262_v25, %v70_v56  ;;  %v421_v60 = vpop.permute.xlu1 %420  ;;  %v130_v17 = vpop.permute.xlu0 %129  ;;  %v452_v7 = vmul.f32 %v411_v18, %v340_v12 }
  0xe6   :  { %v334_v31 = vmax.f32 %v268_v24, 0.0  ;;  %v451_v5 = vmul.f32 %v406_v10, %v339_v61 }
  0xe7   :  { %v459_v30 = vadd.f32 %v444_v23, %v443_v27  ;;  %v333_v32 = vmax.f32 %v263_v28, 0.0  ;;  %v540_v33 = vpop.f32.mrb[4].mxu0  ;;  %v552_v34 = vpop.f32.mrb[4].mxu1 }
  0xe8   :  { %v278_v35 = vadd.f32 %v540_v33, %v85_v63  ;;  %v272_v36 = vpop.f32.mrb[5].mxu0  ;;  %v312_v37 = vpop.f32.mrb[5].mxu1  ;;  %v446_v41 = vmul.f32 %v381_v0, %v334_v31  ;;  %v318_v13 = vadd.f32 %v552_v34, %v125_v54 }
  0xe9   :  { %v445_v38 = vmul.f32 %v376_v62, %v333_v32  ;;  %v273_v39 = vadd.f32 %v272_v36, %v80_v59  ;;  %v303_v62 = vadd.f32 %v302_v26, %v110_v9  ;;  %v313_v16 = vadd.f32 %v312_v37, %v120_v29  ;;  %v426_v19 = vpop.permute.xlu1 %425 }
  0xea   :  { %v336_v43 = vmax.f32 %v278_v35, 0.0  ;;  %v344_v26 = vmax.f32 %v318_v13, 0.0 }
  0xeb   :  { %v460_v42 = vadd.f32 %v459_v30, %v445_v38  ;;  %v335_v44 = vmax.f32 %v273_v39, 0.0  ;;  %v543_v45 = vpop.f32.mrb[6].mxu0  ;;  %v555_v46 = vpop.f32.mrb[6].mxu1  ;;  %v343_v23 = vmax.f32 %v313_v16, 0.0 }
  0xec   :  { %v288_v47 = vadd.f32 %v543_v45, %v95_v3  ;;  %v282_v48 = vpop.f32.mrb[7].mxu0  ;;  %v322_v49 = vpop.f32.mrb[7].mxu1  ;;  %v448_v56 = vmul.f32 %v391_v4, %v336_v43  ;;  %v342_v4 = vmax.f32 %v308_v14, 0.0  ;;  %v481_v43 = vstv %s784_s4 }
  0xed   :  { %v447_v51 = vmul.f32 %v386_v2, %v335_v44  ;;  %v461_v52 = vadd.f32 %v460_v42, %v446_v41  ;;  %v283_v53 = vadd.f32 %v282_v48, %v90_v1  ;;  %v341_v2 = vmax.f32 %v303_v62, 0.0  ;;  %v431_v22 = vpop.permute.xlu1 %430 }
  0xee   :  { %v338_v58 = vmax.f32 %v288_v47, 0.0  ;;  %v323_v9 = vadd.f32 %v322_v49, %v130_v17  ;;  %v454_v25 = vmul.f32 %v421_v60, %v342_v4  ;;  %v455_v27 = vmul.f32 %v426_v19, %v343_v23 }
  0xef   :  { %v462_v57 = vadd.f32 %v461_v52, %v447_v51  ;;  %v337_v59 = vmax.f32 %v283_v53, 0.0  ;;  %v453_v21 = vmul.f32 %v416_v40, %v341_v2  ;;  %v456_v29 = vmul.f32 %v431_v22, %v344_v26 }
  0xf0   :  { %v450_v3 = vmul.f32 %v401_v8, %v338_v58  ;;  %v345_v10 = vmax.f32 %v323_v9, 0.0 }
  0xf1   :  { %v449_v63 = vmul.f32 %v396_v6, %v337_v59  ;;  %v463_v0 = vadd.f32 %v462_v57, %v448_v56  ;;  %v135_v6 = vpop.permute.xlu0 %134  ;;  %v441_v34 = vpop.permute.xlu1 %440 }
  0xf2   :  { %v328_v11 = vadd.f32 %v555_v46, %v135_v6 }
  0xf3   :  { %v464_v15 = vadd.f32 %v463_v0, %v449_v63 }
  0xf4   :  { %v346_v30 = vmax.f32 %v328_v11, 0.0 }
  0xf5   :  { %v465_v1 = vadd.f32 %v464_v15, %v450_v3  ;;  %v436_v18 = vpop.permute.xlu0 %435 }
  0xf6   :  { %v457_v32 = vmul.f32 %v436_v18, %v345_v10  ;;  %v458_v35 = vmul.f32 %v441_v34, %v346_v30 }
  0xf7   :  { %v466_v20 = vadd.f32 %v465_v1, %v451_v5 }
  0xf9   :  { %v467_v24 = vadd.f32 %v466_v20, %v452_v7 }
  0xfb   :  { %v468_v8 = vadd.f32 %v467_v24, %v453_v21 }
  0xfd   :  { %v469_v28 = vadd.f32 %v468_v8, %v454_v25 }
  0xff   :  { %v470_v31 = vadd.f32 %v469_v28, %v455_v27 }
 0x101   :  { %v471_v33 = vadd.f32 %v470_v31, %v456_v29 }
 0x103   :  { %v472_v36 = vadd.f32 %v471_v33, %v457_v32 }
 0x105   :  { %v473_v37 = vadd.f32 %v472_v36, %v458_v35 }
 0x107   :  { %v474_v38 = vrot.slane %v473_v37, 4 }
 0x109   :  { %v475_v39 = vadd.f32 %v474_v38, %v473_v37 }
 0x10b   :  { %v476_v40 = vrot.slane %v475_v39, 2 }
 0x10d   :  { %v477_v41 = vadd.f32 %v476_v40, %v475_v39 }
 0x10f   :  { %v478_v42 = vrot.slane %v477_v41, 1 }
 0x111   :  { %v479_v44 = vadd.f32 %v478_v42, %v477_v41 }
 0x113   :  { %v482_v45 = vadd.f32 %v481_v43, %v479_v44 }
 0x115   :  { %483 = vst [vmem:[%s785_s5] sm:$0x1] %v482_v45 }

</bundles_post_ra>
